<compile_context>
chip_gen: v6e
topology: v6e:2x2x1
jax: 0.10.0
libtpu: 0.0.40
codegen_flags: <defaults>
</compile_context>

<pallas_src>
import math
from functools import partial

import jax
import jax.numpy as jnp
from jax import lax
from jax.experimental import pallas as pl
from jax.experimental.pallas import tpu as pltpu


# ---------------------------------------------------------------------------
# Tiling / padding helpers
# ---------------------------------------------------------------------------

def _round_up(x, m):
    return ((x + m - 1) // m) * m


def _gemm_tiling(dim, target, align):
    """Return (tile, padded_dim) with tile | padded_dim, tile <= max(target, dim<=target)."""
    if dim <= target:
        return dim, dim                      # full dim: always a legal block shape
    n = -(-dim // target)                    # number of blocks
    tile = _round_up(-(-dim // n), align)    # aligned tile, <= target (targets are aligned)
    return tile, n * tile


def _largest_divisor_tile(dim, target, align):
    """Largest multiple of `align` that divides `dim` (a multiple of align) and is <= target."""
    best = align
    units = dim // align
    for d in range(1, target // align + 1):
        if units % d == 0:
            best = d * align
    return best


def _self_attn_tiling(S, tq_target, tk_target, sub_align):
    """Shared-sequence (self-attention) tiling: (tq, tk, S_pad) with tq|S_pad and tk|S_pad."""
    if S <= tq_target:
        Sp = _round_up(S, sub_align)
        return Sp, Sp, Sp
    Sp = _round_up(S, 128)                   # KV tile stays lane-aligned (128)
    tq = _largest_divisor_tile(Sp, tq_target, sub_align)
    tk = _largest_divisor_tile(Sp, tk_target, 128)
    return tq, tk, Sp


def _q_tiling(Sq, tq_target, sub_align):
    Sp = _round_up(Sq, sub_align)
    if Sq <= tq_target:
        return Sp, Sp
    return _largest_divisor_tile(Sp, tq_target, sub_align), Sp


def _kv_tiling(Sk, tk_target, sub_align):
    if Sk <= tk_target:
        Sp = _round_up(Sk, sub_align)
        return Sp, Sp
    Sp = _round_up(Sk, 128)
    return _largest_divisor_tile(Sp, tk_target, 128), Sp


def _pad_dim(x, axis, new_size):
    if x.shape[axis] == new_size:
        return x
    widths = [(0, 0)] * x.ndim
    widths[axis] = (0, new_size - x.shape[axis])
    return jnp.pad(x, widths)


def _vmem_limit(block_bytes, scratch_bytes):
    """Right-sized scoped-VMEM budget: double-buffered blocks + scratch + margin."""
    return int(max(2 * block_bytes + scratch_bytes + (8 << 20), 16 << 20))


# ---------------------------------------------------------------------------
# Pallas kernels
# ---------------------------------------------------------------------------

def _linear_kernel(x_ref, w_ref, b_ref, o_ref, acc_ref):
    # x_ref: (tm, tk); w_ref: (tn, tk) [PyTorch (out, in) layout]; b_ref: (1, tn).
    k = pl.program_id(2)

    @pl.when(k == 0)
    def _():
        acc_ref[...] = jnp.zeros(acc_ref.shape, acc_ref.dtype)

    # y += x @ w.T  -- contract last dims of both operands; no transpose materialized.
    acc_ref[...] += lax.dot_general(
        x_ref[...], w_ref[...],
        dimension_numbers=(((1,), (1,)), ((), ())),
        preferred_element_type=jnp.float32)

    @pl.when(k == pl.num_programs(2) - 1)
    def _():
        o_ref[...] = (acc_ref[...] + b_ref[...].astype(jnp.float32)).astype(o_ref.dtype)


def _flash_attn_kernel(q_ref, k_ref, v_ref, o_ref, m_ref, l_ref, acc_ref,
                       *, num_heads, block_k, kv_len, need_mask):
    # q_ref: (tq, H, d_k); k_ref/v_ref: (tk, H, d_k); o_ref: (tq, H, d_k).
    # Scratch (f32): m_ref/l_ref (H, tq, 1), acc_ref (H, tq, d_k).
    # 1/sqrt(d_k) is pre-folded into the Q projection weights -> no per-step scale.
    ki = pl.program_id(2)

    @pl.when(ki == 0)
    def _():
        m_ref[...] = jnp.full(m_ref.shape, -jnp.inf, m_ref.dtype)
        l_ref[...] = jnp.zeros(l_ref.shape, l_ref.dtype)
        acc_ref[...] = jnp.zeros(acc_ref.shape, acc_ref.dtype)

    if need_mask:  # static: only traced when the KV length was padded
        key_idx = ki * block_k + lax.broadcasted_iota(
            jnp.int32, (q_ref.shape[0], k_ref.shape[0]), 1)
        invalid = key_idx >= kv_len                                  # (tq, tk)

    # Per-head online softmax (static unroll -> 2-D MXU dots only).
    for head in range(num_heads):
        q = q_ref[:, head, :]                                        # (tq, d_k)
        k = k_ref[:, head, :]                                        # (tk, d_k)
        v = v_ref[:, head, :]                                        # (tk, d_k)

        # scores = Q K^T (f32 accumulation on the MXU; contract last dims, no transpose)
        s = lax.dot_general(
            q, k,
            dimension_numbers=(((1,), (1,)), ((), ())),
            preferred_element_type=jnp.float32)                      # (tq, tk)
        if need_mask:
            s = jnp.where(invalid, -1e30, s)

        m_prev = m_ref[head]                                         # (tq, 1)
        m_new = jnp.maximum(m_prev, jnp.max(s, axis=-1, keepdims=True))
        alpha = jnp.exp(m_prev - m_new)
        p = jnp.exp(s - m_new)                                       # (tq, tk)

        l_ref[head] = alpha * l_ref[head] + jnp.sum(p, axis=-1, keepdims=True)
        acc_ref[head] = alpha * acc_ref[head] + jnp.dot(
            p.astype(v.dtype), v, preferred_element_type=jnp.float32)
        m_ref[head] = m_new

    @pl.when(ki == pl.num_programs(2) - 1)
    def _():
        for head in range(num_heads):
            # Exact divide: runs once per Q block (epilogue), so it is effectively free.
            o_ref[:, head, :] = (acc_ref[head] / l_ref[head]).astype(o_ref.dtype)


# ---------------------------------------------------------------------------
# pallas_call wrappers
# ---------------------------------------------------------------------------

def pallas_linear_2d(x, w, b, *, tm_target=512, tn_target=512, tk_target=512):
    """y = x @ w.T + b.  x: (M, K); w: (N, K) (PyTorch layout); b: (N,) -> (M, N)."""
    M, K = x.shape
    N = w.shape[0]
    tm, Mp = _gemm_tiling(M, tm_target, 8)
    tn, Np = _gemm_tiling(N, tn_target, 128)
    tk, Kp = _gemm_tiling(K, tk_target, 128)

    xp = _pad_dim(_pad_dim(x, 0, Mp), 1, Kp)     # zero-pad is exact for a GEMM
    wp = _pad_dim(_pad_dim(w, 0, Np), 1, Kp)
    bp = _pad_dim(b.reshape(1, N), 1, Np)

    itemsize = jnp.dtype(x.dtype).itemsize
    block_bytes = (tm * tk + tn * tk + tn + tm * tn) * itemsize
    limit = _vmem_limit(block_bytes, tm * tn * 4)

    out = pl.pallas_call(
        _linear_kernel,
        out_shape=jax.ShapeDtypeStruct((Mp, Np), x.dtype),
        grid=(Mp // tm, Np // tn, Kp // tk),                 # M leading (largest parallel axis)
        in_specs=[
            pl.BlockSpec((tm, tk), lambda i, j, kk: (i, kk)),
            pl.BlockSpec((tn, tk), lambda i, j, kk: (j, kk)),
            pl.BlockSpec((1, tn), lambda i, j, kk: (0, j)),
        ],
        out_specs=pl.BlockSpec((tm, tn), lambda i, j, kk: (i, j)),
        scratch_shapes=[pltpu.VMEM((tm, tn), jnp.float32)],
        compiler_params=pltpu.CompilerParams(
            dimension_semantics=("parallel", "parallel", "arbitrary"),
            vmem_limit_bytes=limit),
    )(xp, wp, bp)
    if (Mp, Np) != (M, N):
        out = out[:M, :N]
    return out


def _attention_fused_qkv(qkv, *, tq_target=256, tk_target=512):
    """Self-attention. qkv: (B, S, 3, H, d_k) (q pre-scaled). Returns (B, S, H, d_k)."""
    B, S, _, H, d_k = qkv.shape
    sub = 8 if jnp.dtype(qkv.dtype).itemsize >= 4 else 16
    tq, tk, S_pad = _self_attn_tiling(S, tq_target, tk_target, sub)
    need_mask = S_pad != S
    if need_mask:
        qkv = jnp.pad(qkv, ((0, 0), (0, S_pad - S), (0, 0), (0, 0), (0, 0)))

    kernel = partial(_flash_attn_kernel, num_heads=H, block_k=tk,
                     kv_len=S, need_mask=need_mask)

    itemsize = jnp.dtype(qkv.dtype).itemsize
    block_bytes = (2 * tq + 2 * tk) * H * d_k * itemsize
    scratch_bytes = (2 * H * tq + H * tq * d_k) * 4
    limit = _vmem_limit(block_bytes, scratch_bytes)

    out = pl.pallas_call(
        kernel,
        out_shape=jax.ShapeDtypeStruct((B, S_pad, H, d_k), qkv.dtype),
        grid=(B, S_pad // tq, S_pad // tk),
        in_specs=[
            # Q / K / V are read straight out of the fused projection output; the
            # "which of q/k/v" dim (index 2) and batch dim are squeezed via None.
            pl.BlockSpec((None, tq, None, H, d_k), lambda b, qi, ki: (b, qi, 0, 0, 0)),
            pl.BlockSpec((None, tk, None, H, d_k), lambda b, qi, ki: (b, ki, 1, 0, 0)),
            pl.BlockSpec((None, tk, None, H, d_k), lambda b, qi, ki: (b, ki, 2, 0, 0)),
        ],
        out_specs=pl.BlockSpec((None, tq, H, d_k), lambda b, qi, ki: (b, qi, 0, 0)),
        scratch_shapes=[
            pltpu.VMEM((H, tq, 1), jnp.float32),    # running max m
            pltpu.VMEM((H, tq, 1), jnp.float32),    # running sum l
            pltpu.VMEM((H, tq, d_k), jnp.float32),  # output accumulator
        ],
        compiler_params=pltpu.CompilerParams(
            dimension_semantics=("parallel", "parallel", "arbitrary"),
            vmem_limit_bytes=limit),
    )(qkv, qkv, qkv)
    if need_mask:
        out = out[:, :S]
    return out


def _attention_separate(q, k, v, *, tq_target=256, tk_target=512):
    """Cross-attention. q: (B, Sq, H, d_k) (pre-scaled); k, v: (B, Sk, H, d_k)."""
    B, Sq, H, d_k = q.shape
    Sk = k.shape[1]
    sub = 8 if jnp.dtype(q.dtype).itemsize >= 4 else 16
    tq, Sq_pad = _q_tiling(Sq, tq_target, sub)
    tk, Sk_pad = _kv_tiling(Sk, tk_target, sub)
    if Sq_pad != Sq:
        q = jnp.pad(q, ((0, 0), (0, Sq_pad - Sq), (0, 0), (0, 0)))
    need_mask = Sk_pad != Sk
    if need_mask:
        pad = ((0, 0), (0, Sk_pad - Sk), (0, 0), (0, 0))
        k = jnp.pad(k, pad)
        v = jnp.pad(v, pad)

    kernel = partial(_flash_attn_kernel, num_heads=H, block_k=tk,
                     kv_len=Sk, need_mask=need_mask)

    itemsize = jnp.dtype(q.dtype).itemsize
    block_bytes = (2 * tq + 2 * tk) * H * d_k * itemsize
    scratch_bytes = (2 * H * tq + H * tq * d_k) * 4
    limit = _vmem_limit(block_bytes, scratch_bytes)

    out = pl.pallas_call(
        kernel,
        out_shape=jax.ShapeDtypeStruct((B, Sq_pad, H, d_k), q.dtype),
        grid=(B, Sq_pad // tq, Sk_pad // tk),
        in_specs=[
            pl.BlockSpec((None, tq, H, d_k), lambda b, qi, ki: (b, qi, 0, 0)),
            pl.BlockSpec((None, tk, H, d_k), lambda b, qi, ki: (b, ki, 0, 0)),
            pl.BlockSpec((None, tk, H, d_k), lambda b, qi, ki: (b, ki, 0, 0)),
        ],
        out_specs=pl.BlockSpec((None, tq, H, d_k), lambda b, qi, ki: (b, qi, 0, 0)),
        scratch_shapes=[
            pltpu.VMEM((H, tq, 1), jnp.float32),
            pltpu.VMEM((H, tq, 1), jnp.float32),
            pltpu.VMEM((H, tq, d_k), jnp.float32),
        ],
        compiler_params=pltpu.CompilerParams(
            dimension_semantics=("parallel", "parallel", "arbitrary"),
            vmem_limit_bytes=limit),
    )(q, k, v)
    if Sq_pad != Sq:
        out = out[:, :Sq]
    return out


# ---------------------------------------------------------------------------
# MultiHeadAttention forward (glue in plain JAX, hot paths in Pallas)
# ---------------------------------------------------------------------------

def init_mha_params(key, h, d_model, dtype=jnp.float32):
    """4 linear layers (Wq, Wk, Wv, Wo), PyTorch-style (out, in) weights."""
    bound = 1.0 / math.sqrt(d_model)
    params = []
    for i in range(4):
        kw, kb = jax.random.split(jax.random.fold_in(key, i))
        w = jax.random.uniform(kw, (d_model, d_model), dtype, -bound, bound)
        b = jax.random.uniform(kb, (d_model,), dtype, -bound, bound)
        params.append((w, b))
    return params


def fuse_mha_params(params, h):
    """One-time parameter prep: concat W_qkv/b_qkv and fold 1/sqrt(d_k) into Wq/bq."""
    (wq, bq), (wk, bk), (wv, bv), (wo, bo) = params
    d_model = wq.shape[0]
    scale = 1.0 / math.sqrt(d_model // h)
    w_qkv = jnp.concatenate([wq * scale, wk, wv], axis=0)   # (3*d_model, d_model)
    b_qkv = jnp.concatenate([bq * scale, bk, bv], axis=0)   # (3*d_model,)
    return {"w_qkv": w_qkv, "b_qkv": b_qkv, "wo": wo, "bo": bo, "h": h}


def multi_head_attention(fused, Q, K, V):
    """Q: (B, Sq, d_model); K/V: (B, Sk, d_model). mask=None, eval mode (dropout=identity)."""
    h = fused["h"]
    w_qkv, b_qkv, wo, bo = fused["w_qkv"], fused["b_qkv"], fused["wo"], fused["bo"]
    B, Sq, d_model = Q.shape
    d_k = d_model // h

    if (Q is K) and (K is V):
        # Self-attention fast path: ONE GEMM for Q/K/V, no activation stacking,
        # and no head transposes (the attention kernel indexes the layout directly).
        qkv = pallas_linear_2d(Q.reshape(B * Sq, d_model), w_qkv, b_qkv)
        qkv = qkv.reshape(B, Sq, 3, h, d_k)                  # free reshape
        x = _attention_fused_qkv(qkv)                        # (B, Sq, h, d_k)
    else:
        # Cross-attention fallback: separate projections (Q scale already folded
        # into the first d_model rows of w_qkv / b_qkv).
        d = d_model

        def proj(x_, w_, b_):
            Bc, Sc, _ = x_.shape
            y = pallas_linear_2d(x_.reshape(Bc * Sc, d), w_, b_)
            return y.reshape(Bc, Sc, h, d_k)                 # free reshape

        q = proj(Q, w_qkv[:d], b_qkv[:d])
        k = proj(K, w_qkv[d:2 * d], b_qkv[d:2 * d])
        v = proj(V, w_qkv[2 * d:], b_qkv[2 * d:])
        x = _attention_separate(q, k, v)                     # (B, Sq, h, d_k)

    # Merge heads (free reshape, layout already (B, Sq, H, d_k)) + output projection.
    x = x.reshape(B * Sq, d_model)
    return pallas_linear_2d(x, wo, bo).reshape(B, Sq, d_model)


# Pure-JAX reference for sanity checking.
def reference_mha(params, Q, K, V, h):
    (wq, bq), (wk, bk), (wv, bv), (wo, bo) = params
    B, _, d_model = Q.shape
    d_k = d_model // h

    def proj(x, w, b):
        y = x @ w.T + b
        return jnp.transpose(y.reshape(B, -1, h, d_k), (0, 2, 1, 3))

    q, k, v = proj(Q, wq, bq), proj(K, wk, bk), proj(V, wv, bv)
    s = jnp.einsum("bhqd,bhkd->bhqk", q, k) / math.sqrt(d_k)
    p = jax.nn.softmax(s, axis=-1)
    x = jnp.einsum("bhqk,bhkd->bhqd", p, v)
    x = jnp.transpose(x, (0, 2, 1, 3)).reshape(B, -1, h * d_k)
    return x @ wo.T + bo


if __name__ == "__main__":
    B, S, d_model, h = 2, 8, 32, 4

    key = jax.random.PRNGKey(0)
    kx, kkv, kp = jax.random.split(key, 3)
    X = jax.random.normal(kx, (B, S, d_model), jnp.float32)

    params = init_mha_params(kp, h, d_model)
    fused = fuse_mha_params(params, h)

    # Self-attention: fused QKV GEMM + transpose-free flash attention.
    out = jax.block_until_ready(multi_head_attention(fused, X, X, X))
    ref = reference_mha(params, X, X, X, h)
    assert out.shape == (B, S, d_model)
    assert jnp.allclose(out, ref, atol=2e-3, rtol=2e-3), "self-attention mismatch"

    # Cross-attention (different KV length) exercises the separate-tensor path.
    KV = jax.random.normal(kkv, (B, 2 * S, d_model), jnp.float32)
    out_x = jax.block_until_ready(multi_head_attention(fused, X, KV, KV))
    ref_x = reference_mha(params, X, KV, KV, h)
    assert out_x.shape == (B, S, d_model)
    assert jnp.allclose(out_x, ref_x, atol=2e-3, rtol=2e-3), "cross-attention mismatch"

    print("KERNEL_OK")
</pallas_src>

<mosaic_0001>
module attributes {stable_mosaic.version = 11 : i64} {
  func.func @_linear_kernel(%arg0: i32, %arg1: i32, %arg2: i32, %arg3: memref<16x32xf32, #tpu.memory_space<vmem>>, %arg4: memref<96x32xf32, #tpu.memory_space<vmem>>, %arg5: memref<1x96xf32, #tpu.memory_space<vmem>>, %arg6: memref<16x96xf32, #tpu.memory_space<vmem>>, %arg7: memref<16x96xf32, #tpu.memory_space<vmem>>) attributes {dimension_semantics = [#tpu.dimension_semantics<parallel>, #tpu.dimension_semantics<parallel>, #tpu.dimension_semantics<arbitrary>], iteration_bounds = array<i64: 1, 1, 1>, scalar_prefetch = 0 : i64, scratch_operands = 1 : i64, tpu.core_type = #tpu.core_type<tc>, window_params = [{transform_indices = @transform_0, window_bounds = array<i64: 16, 32>}, {transform_indices = @transform_1, window_bounds = array<i64: 96, 32>}, {transform_indices = @transform_2, window_bounds = array<i64: 1, 96>}, {transform_indices = @transform_3, window_bounds = array<i64: 16, 96>}]} {
    %c0_i32 = arith.constant 0 : i32
    %0 = arith.cmpi eq, %arg2, %c0_i32 : i32
    %1 = arith.extui %0 : i1 to i32
    %c0_i32_0 = arith.constant 0 : i32
    %2 = arith.cmpi ne, %1, %c0_i32_0 : i32
    scf.if %2 {
      %cst_10 = arith.constant 0.000000e+00 : f32
      %12 = vector.broadcast %cst_10 : f32 to vector<16x96xf32>
      %c0_11 = arith.constant 0 : index
      %c0_12 = arith.constant 0 : index
      %13 = vector.load %arg7[%c0_11, %c0_12] : memref<16x96xf32, #tpu.memory_space<vmem>>, vector<16x96xf32>
      tpu.vector_store %arg7[%c0_11, %c0_12], %12 {strides = array<i32>} : memref<16x96xf32, #tpu.memory_space<vmem>>, vector<16x96xf32>,
    } else {
    }
    %c0 = arith.constant 0 : index
    %c0_1 = arith.constant 0 : index
    %3 = vector.load %arg7[%c0, %c0_1] : memref<16x96xf32, #tpu.memory_space<vmem>>, vector<16x96xf32>
    %c0_2 = arith.constant 0 : index
    %c0_3 = arith.constant 0 : index
    %4 = vector.load %arg3[%c0_2, %c0_3] : memref<16x32xf32, #tpu.memory_space<vmem>>, vector<16x32xf32>
    %c0_4 = arith.constant 0 : index
    %c0_5 = arith.constant 0 : index
    %5 = vector.load %arg4[%c0_4, %c0_5] : memref<96x32xf32, #tpu.memory_space<vmem>>, vector<96x32xf32>
    %cst = arith.constant dense<0.000000e+00> : vector<16x96xf32>
    %6 = tpu.matmul %4, %5, %cst {dimension_numbers = #tpu.dot_dimension_numbers<[1], [1], [0], [0], [0, 0, 1, 0], [], []>} : vector<16x32xf32>, vector<96x32xf32>, vector<16x96xf32> -> vector<16x96xf32>
    %7 = arith.addf %3, %6 : vector<16x96xf32>
    %c0_6 = arith.constant 0 : index
    %c0_7 = arith.constant 0 : index
    %8 = vector.load %arg7[%c0_6, %c0_7] : memref<16x96xf32, #tpu.memory_space<vmem>>, vector<16x96xf32>
    tpu.vector_store %arg7[%c0_6, %c0_7], %7 {strides = array<i32>} : memref<16x96xf32, #tpu.memory_space<vmem>>, vector<16x96xf32>,
    %c0_i32_8 = arith.constant 0 : i32
    %9 = arith.cmpi eq, %arg2, %c0_i32_8 : i32
    %10 = arith.extui %9 : i1 to i32
    %c0_i32_9 = arith.constant 0 : i32
    %11 = arith.cmpi ne, %10, %c0_i32_9 : i32
    scf.if %11 {
      %c0_10 = arith.constant 0 : index
      %c0_11 = arith.constant 0 : index
      %12 = vector.load %arg7[%c0_10, %c0_11] : memref<16x96xf32, #tpu.memory_space<vmem>>, vector<16x96xf32>
      %c0_12 = arith.constant 0 : index
      %c0_13 = arith.constant 0 : index
      %13 = vector.load %arg5[%c0_12, %c0_13] : memref<1x96xf32, #tpu.memory_space<vmem>>, vector<1x96xf32>
      %14 = vector.broadcast %13 : vector<1x96xf32> to vector<16x96xf32>
      %15 = arith.addf %12, %14 : vector<16x96xf32>
      %c0_14 = arith.constant 0 : index
      %c0_15 = arith.constant 0 : index
      %16 = vector.load %arg6[%c0_14, %c0_15] : memref<16x96xf32, #tpu.memory_space<vmem>>, vector<16x96xf32>
      tpu.vector_store %arg6[%c0_14, %c0_15], %15 {strides = array<i32>} : memref<16x96xf32, #tpu.memory_space<vmem>>, vector<16x96xf32>,
    } else {
    }
    return
  }
  func.func @transform_0(%arg0: i32, %arg1: i32, %arg2: i32) -> (i32, i32) {
    %c0_i32 = arith.constant 0 : i32
    return %arg0, %arg2 : i32, i32
  }
  func.func @transform_1(%arg0: i32, %arg1: i32, %arg2: i32) -> (i32, i32) {
    %c0_i32 = arith.constant 0 : i32
    return %arg1, %arg2 : i32, i32
  }
  func.func @transform_2(%arg0: i32, %arg1: i32, %arg2: i32) -> (i32, i32) {
    %c0_i32 = arith.constant 0 : i32
    %c0_i32_0 = arith.constant 0 : i32
    return %c0_i32, %arg1 : i32, i32
  }
  func.func @transform_3(%arg0: i32, %arg1: i32, %arg2: i32) -> (i32, i32) {
    %c0_i32 = arith.constant 0 : i32
    return %arg0, %arg1 : i32, i32
  }
}

</mosaic_0001>

<bundles_post_ra>
// kernel: tpu_custom_call.1
= control target key start
LH: loop header
LB: loop body
LE: loop exit
PB: predicated region body
PF: predicated region fallthrough
CT: control target
= control target key end

     0   :  { %vm38_vm0 = vcmask 261120   ;;  %vm19_vm1 = vcmask 785408   ;;  %v275_v2 = vmov 0.0   ;;  %s379_s0 = inlined_call_operand.vmem [shape: f32[16,32], index: 0, kind: input, shape index: {}]   ;;  %s380_s1 = inlined_call_operand.vmem [shape: f32[96,32], index: 1, kind: input, shape index: {}]   ;;  %s381_s2 = inlined_call_operand.vmem [shape: f32[1,96], index: 2, kind: input, shape index: {}]   ;;  %s382_s3 = inlined_call_operand.hbm [shape: f32[16,96], index: 3, kind: output, shape index: {}]  }
   0x1   :  { %v37_v0 = vld [vmem:[%s380_s1 + $0x58] sm:$0xff]  ;;  %v36_v1 = vld [vmem:[%s380_s1 + $0x50] sm:$0xff]  ;;  %21 = vst.msk [vmem:[#allocation2 + $0x8] sm:$0xff] %vm19_vm1, %v275_v2  ;;  %20 = vst.msk [vmem:[#allocation2] sm:$0xff] %vm19_vm1, %v275_v2 }
   0x2   :  { %222 = vmatprep.subr.msk.mxu0 %vm38_vm0, %v37_v0  ;;  %v35_v3 = vld [vmem:[%s380_s1 + $0x48] sm:$0xff]  ;;  %v24_v4 = vld [vmem:[%s379_s0] sm:$0xff] }
   0x3   :  { %223 = vmatpush3.xpose.msk.msra.mxu0 %vm38_vm0, %v37_v0 }
   0x4   :  { %224 = vmatprep.subr.msk.mxu0 %vm38_vm0, %v36_v1 }
   0x5   :  { %8 = vsyncpa [#allocation4], 0  ;;  %246 = vmatprep.mubr.msk.f32.mxu0 %vm38_vm0, %v24_v4  ;;  %v34_v5 = vld [vmem:[%s380_s1 + $0x40] sm:$0xff]  ;;  %v33_v6 = vld [vmem:[%s380_s1 + $0x38] sm:$0xff]  ;;  %s276_s14 = smov [#allocation3]  }
   0x6   :  { %v32_v7 = vld [vmem:[%s380_s1 + $0x30] sm:$0xff]  ;;  %v31_v8 = vld [vmem:[%s380_s1 + $0x28] sm:$0xff]  ;;  %v30_v9 = vld [vmem:[%s380_s1 + $0x20] sm:$0xff]  ;;  %s182_s15 = sshll.u32 %s276_s14, 4  ;;  %s183_s15 = int_to_ptr.vmem [resolvable:$true] %s182_s15 }
   0x7   :  { %225 = vmatpush3.xpose.msk.msra.mxu0 %vm38_vm0, %v36_v1  ;;  %v29_v10 = vld [vmem:[%s380_s1 + $0x18] sm:$0xff]  ;;  %v28_v11 = vld [vmem:[%s380_s1 + $0x10] sm:$0xff]  ;;  %v27_v12 = vld [vmem:[%s380_s1 + $0x8] sm:$0xff]  ;;  %p258_p1 = scmp.lt.s32.totalorder %s183_s15, %s183_s15 }
   0x8   :  { %226 = vmatprep.subr.msk.mxu0 %vm38_vm0, %v35_v3  ;;  %v26_v13 = vld [vmem:[%s380_s1] sm:$0xff]  ;;  %v25_v14 = vld [vmem:[%s379_s0 + $0x8] sm:$0xff]  ;;  %s253_s0 = scalar_lea.vmem %s183_s15, 256 }
   0x9   :  { %v23_v15 = vld [vmem:[#allocation2 + $0x8] sm:$0xff]  ;;  %v22_v17 = vld [vmem:[#allocation2] sm:$0xff]  ;;  %p254_p0 = scmp.ne.s32.totalorder %s183_s15, %s253_s0  ;;  %p259_p2 = scmp.lt.s32.totalorder %s253_s0, %s253_s0 }
   0xa   :  { %v207_v21 = vld [vmem:[%s381_s2] ss:$0 sm:$0xff] }
   0xb   :  { %227 = vmatpush3.xpose.msk.msra.mxu0 %vm38_vm0, %v35_v3  ;;  %p260_p3 = por %p259_p2, %p258_p1 }
   0xc   :  { %228 = vmatprep.subr.msk.mxu0 %vm38_vm0, %v34_v5 }
   0xd   :  { %p261_p4 = pnand %p260_p3, %p254_p0 }
   0xf   :  { %229 = vmatpush3.xpose.msk.msra.mxu0 %vm38_vm0, %v34_v5 }
  0x10   :  { %230 = vmatprep.subr.msk.mxu0 %vm38_vm0, %v33_v6 }
  0x13   :  { %231 = vmatpush3.xpose.msk.msra.mxu0 %vm38_vm0, %v33_v6 }
  0x14   :  { %232 = vmatprep.subr.msk.mxu0 %vm38_vm0, %v32_v7 }
  0x17   :  { %233 = vmatpush3.xpose.msk.msra.mxu0 %vm38_vm0, %v32_v7 }
  0x18   :  { %234 = vmatprep.subr.msk.mxu0 %vm38_vm0, %v31_v8 }
  0x1b   :  { %235 = vmatpush3.xpose.msk.msra.mxu0 %vm38_vm0, %v31_v8 }
  0x1c   :  { %236 = vmatprep.subr.msk.mxu0 %vm38_vm0, %v30_v9 }
  0x1f   :  { %237 = vmatpush3.xpose.msk.msra.mxu0 %vm38_vm0, %v30_v9 }
  0x20   :  { %238 = vmatprep.subr.msk.mxu0 %vm38_vm0, %v29_v10 }
  0x23   :  { %239 = vmatpush3.xpose.msk.msra.mxu0 %vm38_vm0, %v29_v10 }
  0x24   :  { %240 = vmatprep.subr.msk.mxu0 %vm38_vm0, %v28_v11 }
  0x27   :  { %241 = vmatpush3.xpose.msk.msra.mxu0 %vm38_vm0, %v28_v11 }
  0x28   :  { %242 = vmatprep.subr.msk.mxu0 %vm38_vm0, %v27_v12 }
  0x2b   :  { %243 = vmatpush3.xpose.msk.msra.mxu0 %vm38_vm0, %v27_v12 }
  0x2c   :  { %244 = vmatprep.subr.msk.mxu0 %vm38_vm0, %v26_v13 }
  0x2f   :  { %245 = vmatpush3.xpose.msk.msra.mxu0 %vm38_vm0, %v26_v13 }
  0x32   :  { %247 = vmatmul.mubr.msk.f32.vlgmr.msra.gmra.mxu0 %vm38_vm0, %v25_v14 }
  0xf2   :  { %v248_v16 = vpop.f32.mrf.mxu0 }
  0xf3   :  { %v157_v18 = vadd.f32 %v248_v16, %v23_v15 }
  0xf4   :  { %v147_v19 = vpop.f32.mrf.mxu0 }
  0xf5   :  { %160 = vst.msk [vmem:[#allocation2 + $0x8] sm:$0xff] %vm19_vm1, %v157_v18  ;;  %v156_v20 = vadd.f32 %v147_v19, %v22_v17 }
  0xf7   :  { %159 = vst.msk [vmem:[#allocation2] sm:$0xff] %vm19_vm1, %v156_v20 }
  0xfc   :  { %v165_v22 = vld [vmem:[#allocation2 + $0x8] sm:$0xff] }
  0xfd   :  { %v174_v23 = vadd.f32 %v207_v21, %v165_v22 }
  0xfe   :  { %v164_v24 = vld [vmem:[#allocation2] sm:$0xff] }
  0xff   :  { %v173_v25 = vadd.f32 %v207_v21, %v164_v24  ;;  %176 = vst.msk [vmem:[#allocation3 + $0x8] sm:$0xff] %vm19_vm1, %v174_v23 }
 0x101   :  { %175 = vst.msk [vmem:[#allocation3] sm:$0xff] %vm19_vm1, %v173_v25 }
 0x102   :  { %264 = shalt.err (!%p261_p4)
}
 0x103   :  { %s277_s16 = smov 128   ;;  %s278_s2 = smov 8  }
 0x104   :  { %188 = dma.vmem_to_hbm [thread:$0]  %s183_s15, 256, %s382_s3, [#allocation4], %s277_s16, %s277_s16, %s278_s2  }
 0x105   :  { %273 = dma.done.wait [#allocation4], 256  }
 0x106   :  { %274 = vsyncadd [#allocation4], 4294967040 }
 0x107   :  { %192 = vsyncpa [#allocation4], 1 }

</bundles_post_ra>
